<compile_context>
chip_gen: v7x
topology: tpu7x:2x2x1
jax: 0.10.0
libtpu: 0.0.40
codegen_flags: <defaults>
</compile_context>

<pallas_src>
import functools

import jax
import jax.numpy as jnp
from jax.experimental import pallas as pl
from jax.experimental.pallas import tpu as pltpu


def _disc1_kernel(xt_ref, att_t_ref, w1x_ref, w1a_ref, b1_ref, w2_ref, b2_ref, ot_ref):
    # z1^T = W1x @ x^T + W1a @ att^T + b1   -> [h_dim, tb]  (lane-dense, bf16 MXU, f32 acc)
    z1 = jnp.dot(w1x_ref[...], xt_ref[...], preferred_element_type=jnp.float32)
    z1 = z1 + jnp.dot(att_t_ref[...].T.T if False else w1a_ref[...],  # keep simple: W1a @ att^T
                      att_t_ref[...], preferred_element_type=jnp.float32)
    z1 = z1 + b1_ref[...]                        # [h_dim, 1] broadcast over batch lanes
    a1 = jnp.where(z1 > 0, z1, 0.2 * z1)         # LeakyReLU(0.2)
    # z2^T = w2 @ a1 + b2                   -> [1, tb]      (lane-dense output)
    z2 = jnp.dot(w2_ref[...], a1, preferred_element_type=jnp.float32) + b2_ref[0]
    ot_ref[...] = jnp.maximum(z2, 0.0).astype(ot_ref.dtype)


@functools.partial(jax.jit, static_argnames=("tb",))
def discriminator1_forward(x, att, w1, b1, w2, b2, *, tb=None):
    """x: [B, f_dim], att: [B, atts_dim].
    w1: [h_dim, f_dim+atts_dim] (torch layout), b1: [h_dim]
    w2: [1, h_dim], b2: [1]
    Returns [B, 1] float32."""
    B, f_dim = x.shape
    _, atts_dim = att.shape
    h_dim = w1.shape[0]

    if tb is None:
        # Single grid step for modest B; otherwise large, 128-aligned batch tiles.
        tb = B if B <= 2048 else 2048
    assert tb == B or tb % 128 == 0, "tb must equal B or be a multiple of 128"

    # Batch-last (transposed) layout; bf16 on the bandwidth-dominant streams.
    xt = jnp.transpose(x).astype(jnp.bfloat16)        # [f_dim, B]
    att_t = jnp.transpose(att).astype(jnp.bfloat16)   # [atts_dim, B]
    w1x = w1[:, :f_dim].astype(jnp.bfloat16)          # [h_dim, f_dim]  (native torch layout)
    w1a = w1[:, f_dim:].astype(jnp.bfloat16)          # [h_dim, atts_dim]
    b1c = b1.reshape(h_dim, 1).astype(jnp.float32)    # [h_dim, 1] (broadcast over lanes)
    w2f = w2.astype(jnp.float32)                      # [1, h_dim]  tiny, keep f32
    b2s = b2.reshape(1).astype(jnp.float32)           # scalar -> SMEM

    grid = (pl.cdiv(B, tb),)
    flops = 2 * B * (f_dim + atts_dim) * h_dim + 2 * B * h_dim
    bytes_accessed = (B * (f_dim + atts_dim)) * 2 \
        + (h_dim * (f_dim + atts_dim)) * 2 \
        + (h_dim + h_dim + 1) * 4 + B * 4

    out_t = pl.pallas_call(
        _disc1_kernel,
        out_shape=jax.ShapeDtypeStruct((1, B), jnp.float32),
        grid_spec=pltpu.PrefetchScalarGridSpec(
            num_scalar_prefetch=0,
            grid=grid,
            in_specs=[
                pl.BlockSpec((f_dim, tb), lambda i: (0, i)),        # x^T
                pl.BlockSpec((atts_dim, tb), lambda i: (0, i)),     # att^T
                pl.BlockSpec((h_dim, f_dim), lambda i: (0, 0)),     # W1x
                pl.BlockSpec((h_dim, atts_dim), lambda i: (0, 0)),  # W1a
                pl.BlockSpec((h_dim, 1), lambda i: (0, 0)),         # b1 column
                pl.BlockSpec((1, h_dim), lambda i: (0, 0)),         # w2 row
                pl.BlockSpec(memory_space=pltpu.MemorySpace.SMEM),  # b2 scalar
            ],
            out_specs=pl.BlockSpec((1, tb), lambda i: (0, i)),      # lane-dense [1, B]
        ),
        compiler_params=pltpu.CompilerParams(
            dimension_semantics=("parallel",)),
        cost_estimate=pl.CostEstimate(
            flops=flops, transcendentals=0, bytes_accessed=bytes_accessed),
    )(xt, att_t, w1x, w1a, b1c, w2f, b2s)

    return jnp.transpose(out_t)   # back to torch's [B, 1]


def _reference(x, att, w1, b1, w2, b2):
    h = jnp.concatenate([x, att], axis=1)
    z1 = h @ w1.T + b1
    a1 = jnp.where(z1 > 0, z1, 0.2 * z1)
    z2 = a1 @ w2.T + b2
    return jnp.maximum(z2, 0.0)


if __name__ == "__main__":
    # Small shapes consistent with the module: opts.f_dim=32, opts.atts_dim=16, opts.h_dim=32
    B, f_dim, atts_dim, h_dim = 8, 32, 16, 32

    key = jax.random.PRNGKey(0)
    kx, ka, kw1, kw2 = jax.random.split(key, 4)

    x = jax.random.normal(kx, (B, f_dim), dtype=jnp.float32)
    att = jax.random.normal(ka, (B, atts_dim), dtype=jnp.float32)

    # weights_init: Linear weight ~ N(0, 0.02), bias = 0   (torch layout [out, in])
    w1 = 0.02 * jax.random.normal(kw1, (h_dim, f_dim + atts_dim), dtype=jnp.float32)
    b1 = jnp.zeros((h_dim,), dtype=jnp.float32)
    w2 = 0.02 * jax.random.normal(kw2, (1, h_dim), dtype=jnp.float32)
    b2 = jnp.zeros((1,), dtype=jnp.float32)

    out = discriminator1_forward(x, att, w1, b1, w2, b2)
    out = jax.block_until_ready(out)
    assert out.shape == (B, 1), out.shape

    # Reference computed on bf16-rounded inputs (kernel streams x/att/W1 as bf16,
    # all accumulation / activation math stays f32 on both sides).
    xr = x.astype(jnp.bfloat16).astype(jnp.float32)
    attr = att.astype(jnp.bfloat16).astype(jnp.float32)
    w1r = w1.astype(jnp.bfloat16).astype(jnp.float32)
    ref = _reference(xr, attr, w1r, b1, w2, b2)
    assert jnp.allclose(out, ref, atol=1e-4, rtol=1e-4), "mismatch vs reference"

    # Sanity vs the full-f32 reference (looser, bf16 input rounding only).
    ref32 = _reference(x, att, w1, b1, w2, b2)
    assert jnp.allclose(out, ref32, atol=5e-2, rtol=5e-2), "mismatch vs f32 reference"

    print("KERNEL_OK")
</pallas_src>

<mosaic_0001>
module attributes {stable_mosaic.version = 11 : i64} {
  func.func @_disc1_kernel(%arg0: i32, %arg1: memref<32x8xbf16, #tpu.memory_space<vmem>>, %arg2: memref<16x8xbf16, #tpu.memory_space<vmem>>, %arg3: memref<32x32xbf16, #tpu.memory_space<vmem>>, %arg4: memref<32x16xbf16, #tpu.memory_space<vmem>>, %arg5: memref<32x1xf32, #tpu.memory_space<vmem>>, %arg6: memref<1x32xf32, #tpu.memory_space<vmem>>, %arg7: memref<1xf32, #tpu.memory_space<smem>>, %arg8: memref<1x8xf32, #tpu.memory_space<vmem>>) attributes {dimension_semantics = [#tpu.dimension_semantics<parallel>], iteration_bounds = array<i64: 1>, scalar_prefetch = 0 : i64, scratch_operands = 0 : i64, tpu.core_type = #tpu.core_type<tc>, window_params = [{transform_indices = @transform_0, window_bounds = array<i64: 32, 8>}, {transform_indices = @transform_1, window_bounds = array<i64: 16, 8>}, {pipeline_mode = #tpu.pipeline_mode<synchronous>, transform_indices = @transform_2, window_bounds = array<i64: 32, 32>}, {pipeline_mode = #tpu.pipeline_mode<synchronous>, transform_indices = @transform_3, window_bounds = array<i64: 32, 16>}, {pipeline_mode = #tpu.pipeline_mode<synchronous>, transform_indices = @transform_4, window_bounds = array<i64: 32, 1>}, {pipeline_mode = #tpu.pipeline_mode<synchronous>, transform_indices = @transform_5, window_bounds = array<i64: 1, 32>}, {transform_indices = @transform_6, window_bounds = array<i64: 1>}, {transform_indices = @transform_7, window_bounds = array<i64: 1, 8>}]} {
    %c0 = arith.constant 0 : index
    %c0_0 = arith.constant 0 : index
    %0 = vector.load %arg3[%c0, %c0_0] : memref<32x32xbf16, #tpu.memory_space<vmem>>, vector<32x32xbf16>
    %c0_1 = arith.constant 0 : index
    %c0_2 = arith.constant 0 : index
    %1 = vector.load %arg1[%c0_1, %c0_2] : memref<32x8xbf16, #tpu.memory_space<vmem>>, vector<32x8xbf16>
    %cst = arith.constant dense<0.000000e+00> : vector<32x8xf32>
    %2 = tpu.matmul %0, %1, %cst {dimension_numbers = #tpu.dot_dimension_numbers<[1], [0], [0], [1], [0, 0, 1, 1], [], []>} : vector<32x32xbf16>, vector<32x8xbf16>, vector<32x8xf32> -> vector<32x8xf32>
    %c0_3 = arith.constant 0 : index
    %c0_4 = arith.constant 0 : index
    %3 = vector.load %arg4[%c0_3, %c0_4] : memref<32x16xbf16, #tpu.memory_space<vmem>>, vector<32x16xbf16>
    %c0_5 = arith.constant 0 : index
    %c0_6 = arith.constant 0 : index
    %4 = vector.load %arg2[%c0_5, %c0_6] : memref<16x8xbf16, #tpu.memory_space<vmem>>, vector<16x8xbf16>
    %cst_7 = arith.constant dense<0.000000e+00> : vector<32x8xf32>
    %5 = tpu.matmul %3, %4, %cst_7 {dimension_numbers = #tpu.dot_dimension_numbers<[1], [0], [0], [1], [0, 0, 1, 1], [], []>} : vector<32x16xbf16>, vector<16x8xbf16>, vector<32x8xf32> -> vector<32x8xf32>
    %6 = arith.addf %2, %5 : vector<32x8xf32>
    %c0_8 = arith.constant 0 : index
    %c0_9 = arith.constant 0 : index
    %7 = vector.load %arg5[%c0_8, %c0_9] : memref<32x1xf32, #tpu.memory_space<vmem>>, vector<32x1xf32>
    %8 = vector.broadcast %7 : vector<32x1xf32> to vector<32x8xf32>
    %9 = arith.addf %6, %8 : vector<32x8xf32>
    %cst_10 = arith.constant 0.000000e+00 : f32
    %10 = vector.broadcast %cst_10 : f32 to vector<32x8xf32>
    %11 = arith.cmpf ogt, %9, %10 : vector<32x8xf32>
    %cst_11 = arith.constant 2.000000e-01 : f32
    %12 = vector.broadcast %cst_11 : f32 to vector<32x8xf32>
    %13 = arith.mulf %12, %9 : vector<32x8xf32>
    %14 = arith.select %11, %9, %13 : vector<32x8xi1>, vector<32x8xf32>
    %c0_12 = arith.constant 0 : index
    %c0_13 = arith.constant 0 : index
    %15 = vector.load %arg6[%c0_12, %c0_13] : memref<1x32xf32, #tpu.memory_space<vmem>>, vector<1x32xf32>
    %cst_14 = arith.constant dense<0.000000e+00> : vector<1x8xf32>
    %16 = tpu.matmul %15, %14, %cst_14 {dimension_numbers = #tpu.dot_dimension_numbers<[1], [0], [0], [1], [0, 0, 1, 1], [], []>} : vector<1x32xf32>, vector<32x8xf32>, vector<1x8xf32> -> vector<1x8xf32>
    %c0_15 = arith.constant 0 : index
    %17 = memref.load %arg7[%c0_15] : memref<1xf32, #tpu.memory_space<smem>>
    %18 = vector.broadcast %17 : f32 to vector<1x8xf32>
    %19 = arith.addf %16, %18 : vector<1x8xf32>
    %cst_16 = arith.constant 0.000000e+00 : f32
    %20 = vector.broadcast %cst_16 : f32 to vector<1x8xf32>
    %21 = arith.maximumf %19, %20 : vector<1x8xf32>
    %c0_17 = arith.constant 0 : index
    %c0_18 = arith.constant 0 : index
    %22 = vector.load %arg8[%c0_17, %c0_18] : memref<1x8xf32, #tpu.memory_space<vmem>>, vector<1x8xf32>
    tpu.vector_store %arg8[%c0_17, %c0_18], %21 {strides = array<i32>} : memref<1x8xf32, #tpu.memory_space<vmem>>, vector<1x8xf32>,
    return
  }
  func.func @transform_0(%arg0: i32) -> (i32, i32) {
    %c0_i32 = arith.constant 0 : i32
    %c0_i32_0 = arith.constant 0 : i32
    return %c0_i32, %arg0 : i32, i32
  }
  func.func @transform_1(%arg0: i32) -> (i32, i32) {
    %c0_i32 = arith.constant 0 : i32
    %c0_i32_0 = arith.constant 0 : i32
    return %c0_i32, %arg0 : i32, i32
  }
  func.func @transform_2(%arg0: i32) -> (i32, i32) {
    %c0_i32 = arith.constant 0 : i32
    %c0_i32_0 = arith.constant 0 : i32
    %c0_i32_1 = arith.constant 0 : i32
    return %c0_i32, %c0_i32_0 : i32, i32
  }
  func.func @transform_3(%arg0: i32) -> (i32, i32) {
    %c0_i32 = arith.constant 0 : i32
    %c0_i32_0 = arith.constant 0 : i32
    %c0_i32_1 = arith.constant 0 : i32
    return %c0_i32, %c0_i32_0 : i32, i32
  }
  func.func @transform_4(%arg0: i32) -> (i32, i32) {
    %c0_i32 = arith.constant 0 : i32
    %c0_i32_0 = arith.constant 0 : i32
    %c0_i32_1 = arith.constant 0 : i32
    return %c0_i32, %c0_i32_0 : i32, i32
  }
  func.func @transform_5(%arg0: i32) -> (i32, i32) {
    %c0_i32 = arith.constant 0 : i32
    %c0_i32_0 = arith.constant 0 : i32
    %c0_i32_1 = arith.constant 0 : i32
    return %c0_i32, %c0_i32_0 : i32, i32
  }
  func.func @transform_6(%arg0: i32) -> i32 {
    %c0_i32 = arith.constant 0 : i32
    %c0_i32_0 = arith.constant 0 : i32
    return %c0_i32 : i32
  }
  func.func @transform_7(%arg0: i32) -> (i32, i32) {
    %c0_i32 = arith.constant 0 : i32
    %c0_i32_0 = arith.constant 0 : i32
    return %c0_i32, %arg0 : i32, i32
  }
}

</mosaic_0001>

<bundles_post_ra>
// kernel: discriminator1_forward.1
= control target key start
LH: loop header
LB: loop body
LE: loop exit
PB: predicated region body
PF: predicated region fallthrough
CT: control target
= control target key end

     0   :  { %vm59_vm0 = vcmask 130048   ;;  %vm137_vm1 = vcmask 261120   ;;  %v423_v6 = vmov 0   ;;  %s524_s0 = inlined_call_operand.vmem [shape: bf16[32,8], index: 0, kind: input, shape index: {}]   ;;  %s525_s1 = inlined_call_operand.vmem [shape: bf16[16,8], index: 1, kind: input, shape index: {}]   ;;  %s526_s2 = inlined_call_operand.vmem [shape: bf16[32,32], index: 2, kind: input, shape index: {}]   ;;  %s527_s3 = inlined_call_operand.vmem [shape: bf16[32,16], index: 3, kind: input, shape index: {}]   ;;  %s528_s4 = inlined_call_operand.vmem [shape: f32[32,1], index: 4, kind: input, shape index: {}]   ;;  %s529_s5 = inlined_call_operand.vmem [shape: f32[1,32], index: 5, kind: input, shape index: {}]   ;;  %s530_s6 = inlined_call_operand.<no memory space> [shape: f32[1], index: 6, kind: input, shape index: {}]   ;;  %s531_s7 = inlined_call_operand.hbm [shape: f32[1,8], index: 7, kind: output, shape index: {}]  }
   0x1   :  { %v392_v0 = vld [vmem:[%s524_s0] sm:$0xff]   ;;  %v395_v3 = vld [vmem:[%s524_s0 + $0x8] sm:$0xff]   ;;  %390 = vset.pattern.permute.xlu0 %v423_v6  ;;  %391 = vset.pattern.permute.xlu1 %v423_v6  ;;  %v195_v9 = vld [vmem:[%s528_s4 + $0x10] sm:$0xff] }
   0x2   :  { %v393_v1 = vld [vmem:[%s525_s1] sm:$0xff]   ;;  %356 = vmatprep.subr.bf16.mxu0 %v392_v0  ;;  %v396_v4 = vld [vmem:[%s527_s3 + $0x8] sm:$0xff]  }
   0x3   :  { %v394_v2 = vld [vmem:[%s527_s3] sm:$0xff]   ;;  %350 = vmatprep.subr.bf16.mxu1 %v393_v1  ;;  %357 = vmatpush3.bf16.msra.mxu0 %v392_v0  ;;  %v398_v7 = vld [vmem:[%s526_s2 + $0x8] sm:$0xff]  }
   0x4   :  { %351 = vmatpush3.bf16.msra.mxu1 %v393_v1  ;;  %352 = vmatprep.mubr.msk.bf16.mxu1 %vm59_vm0, %v394_v2  ;;  %v397_v5 = vld [vmem:[%s526_s2] sm:$0xff]  }
   0x5   :  { %358 = vmatprep.subr.bf16.mxu0 %v395_v3  ;;  %v193_v8 = vld [vmem:[%s528_s4] sm:$0xff]  ;;  %360 = vmatprep.mubr.msk.bf16.mxu0 %vm137_vm1, %v397_v5 }
   0x6   :  { %199 = vperm.xlu0 %390, %v193_v8  }
   0x7   :  { %353 = vmatmul.mubr.msk.bf16.vlgmr.msra.gmra.mrb[0].mxu1 %vm59_vm0, %v396_v4  ;;  %359 = vmatpush3.bf16.msra.mxu0 %v395_v3 }
   0x8   :  { %13 = vsyncpa [#allocation4], 0  ;;  %209 = vperm.xlu1 %391, %v195_v9   ;;  %v194_v10 = vld [vmem:[%s528_s4 + $0x8] sm:$0xff]  ;;  %v196_v11 = vld [vmem:[%s528_s4 + $0x18] sm:$0xff]  ;;  %v424_v12 = vmov 0.0|0.0   ;;  %vm425_vm2 = vmmov 0   ;;  %v235_v45 = vstv %s530_s6 }
   0x9   :  { %375 = vmatprep.subr.bf16.mxu1 %v424_v12  ;;  %v426_v13 = vmov 0.0   ;;  %v233_v44 = vld [vmem:[%s529_s5] sm:$0x1]  ;;  %s427_s22 = smov [#allocation3]   ;;  %vm310_vm7 = vcmask 57344  }
   0xa   :  { %361 = vmatmul.mubr.msk.bf16.vlgmr.msra.gmra.mrb[0].mxu0 %vm137_vm1, %v398_v7  ;;  %204 = vperm.xlu0 %390, %v194_v10   ;;  %s318_s23 = sshll.u32 %s427_s22, 4  ;;  %s319_s23 = int_to_ptr.vmem [resolvable:$true] %s318_s23 }
   0xb   :  { %372 = vmatprep.mubr.msk.f32.mxu1 %vm425_vm2, %v426_v13  ;;  %s399_s24 = scalar_lea.vmem %s319_s23, 16  ;;  %s403_s25 = scalar_lea.vmem %s319_s23, 32 }
   0xc   :  { %214 = vperm.xlu1 %391, %v196_v11   ;;  %p400_p0 = scmp.ne.s32.totalorder %s319_s23, %s399_s24  ;;  %p404_p1 = scmp.lt.s32.totalorder %s319_s23, %s319_s23 }
   0xd   :  { %p405_p2 = scmp.lt.s32.totalorder %s403_s25, %s399_s24 }
   0xf   :  { %p406_p3 = por %p405_p2, %p404_p1 }
  0x11   :  { %p407_p4 = pnand %p406_p3, %p400_p0 }
  0x85   :  { %v200_v17 = vpop.permute.xlu0 %199 }
  0x87   :  { %v210_v14 = vpop.permute.xlu1 %209 }
  0x89   :  { %v205_v32 = vpop.permute.xlu0 %204 }
  0x8b   :  { %v215_v25 = vpop.permute.xlu1 %214 }
  0xda   :  { %v354_v15 = vpop.f32.mrb[0].mxu1 }
  0xdb   :  { %v100_v16 = vpop.f32.mrb[1].mxu1 }
  0xdc   :  { %v355_v18 = vpop.f32.mrb[2].mxu1 }
  0xdd   :  { %v103_v19 = vpop.f32.mrb[3].mxu1  ;;  %v362_v20 = vpop.f32.mrb[0].mxu0 }
  0xde   :  { %v187_v21 = vadd.f32 %v362_v20, %v354_v15  ;;  %v178_v22 = vpop.f32.mrb[1].mxu0 }
  0xdf   :  { %v179_v23 = vadd.f32 %v178_v22, %v100_v16  ;;  %v363_v24 = vpop.f32.mrb[2].mxu0 }
  0xe0   :  { %v219_v26 = vadd.f32 %v210_v14, %v187_v21  ;;  %v190_v27 = vadd.f32 %v363_v24, %v355_v18  ;;  %v181_v28 = vpop.f32.mrb[3].mxu0 }
  0xe1   :  { %v217_v29 = vadd.f32 %v200_v17, %v179_v23  ;;  %v182_v30 = vadd.f32 %v181_v28, %v103_v19 }
  0xe2   :  { %v227_v31 = vmul.f32 0.2, %v219_v26  ;;  %v220_v33 = vadd.f32 %v215_v25, %v190_v27  ;;  %vm223_vm3 = vcmp.gt.f32.partialorder %v219_v26, 0.0 }
  0xe3   :  { %v225_v34 = vmul.f32 0.2, %v217_v29  ;;  %v218_v35 = vadd.f32 %v205_v32, %v182_v30  ;;  %vm221_vm4 = vcmp.gt.f32.partialorder %v217_v29, 0.0 }
  0xe4   :  { %vm224_vm5 = vcmp.gt.f32.partialorder %v220_v33, 0.0  ;;  %v228_v36 = vmul.f32 0.2, %v220_v33  ;;  %v231_v38 = vsel %vm223_vm3, %v219_v26, %v227_v31 }
  0xe5   :  { %vm222_vm6 = vcmp.gt.f32.partialorder %v218_v35, 0.0  ;;  %v226_v37 = vmul.f32 0.2, %v218_v35  ;;  %v229_v40 = vsel %vm221_vm4, %v217_v29, %v225_v34 }
  0xe6   :  { %v232_v39 = vsel %vm224_vm5, %v220_v33, %v228_v36 }
  0xe7   :  { %v230_v41 = vsel %vm222_vm6, %v218_v35, %v226_v37  ;;  %v379_v42 = vpack.c.bf16 %v232_v39, %v231_v38 }
  0xe8   :  { %v376_v43 = vpack.c.bf16 %v230_v41, %v229_v40 }
  0xea   :  { %377 = vmatpush3.bf16.msra.mxu1 %v376_v43 }
  0xeb   :  { %378 = vmatprep.subr.bf16.mxu1 %v424_v12 }
  0xee   :  { %380 = vmatpush3.bf16.msra.mxu1 %v379_v42 }
  0xf1   :  { %373 = vmatmul.mubr.msk.f32.vlgmr.msra.gmra.mrb[4].mxu1 %vm137_vm1, %v233_v44 }
 0x1c4   :  { %v305_v46 = vpop.f32.mrb[4].mxu1 }
 0x1c5   :  { %v306_v47 = vadd.f32 %v305_v46, %v235_v45  ;;  %v374_v48 = vpop.f32.mrb[5].mxu1 }
 0x1c7   :  { %v309_v49 = vmax.f32 %v306_v47, 0.0 }
 0x1c9   :  { %311 = vst.msk [vmem:[#allocation3] sm:$0x1] %vm310_vm7, %v309_v49 }
 0x1ca   :  { %410 = shalt.err (!%p407_p4)
}
 0x1cb   :  { %s411_s6 = scalar_lea.hbm %s531_s7, 16 }
 0x1cc   :  { %p412_p5 = scmp.ne.s32.totalorder %s531_s7, %s411_s6  ;;  %p415_p6 = scmp.lt.u32.totalorder %s411_s6, %s531_s7 }
 0x1ce   :  { %p417_p7 = pnand %p415_p6, %p412_p5 }
 0x1d0   :  { %420 = shalt.err (!%p417_p7)
}
 0x1d1   :  { %321 = dma.vmem_to_hbm [thread:$0]  %s319_s23, 16, %s531_s7, [#allocation4]  }
 0x1d2   :  { %421 = dma.done.wait [#allocation4], 16  }
 0x1d3   :  { %422 = vsyncadd [#allocation4], 4294967280 }
 0x1d4   :  { %325 = vsyncpa [#allocation4], 1 }

</bundles_post_ra>
